<compile_context>
chip_gen: v6e
topology: v6e:2x2x1
jax: 0.10.0
libtpu: 0.0.40
codegen_flags: <defaults>
</compile_context>

<pallas_src>
import jax
import jax.numpy as jnp
from jax.experimental import pallas as pl
from jax.experimental.pallas import tpu as pltpu


def _crelu_kernel(x_ref, o_ref):
    # x_ref: (tile_b, [tile_r,] lane)        one lane-dense input tile
    # o_ref: (tile_b, 2, [tile_r,] lane)     half 0 = relu(x), half 1 = relu(-x)
    x = x_ref[...]
    o_ref[:, 0] = jnp.maximum(x, 0).astype(o_ref.dtype)
    o_ref[:, 1] = jnp.maximum(-x, 0).astype(o_ref.dtype)


def _sublane_multiple(dtype) -> int:
    """Rows per vreg sublane group: f32 -> 8, bf16/f16 -> 16, int8/fp8 -> 32."""
    return max(8, 32 // max(1, jnp.dtype(dtype).itemsize))


def _pick_lane_dim(m: int, sub: int, max_lanes: int = 4096) -> int:
    """Multiple-of-128 divisor of m. Prefer the largest one with m//lane >= sub
    (dense sublanes); otherwise the smallest divisor (maximizes row count).
    Returns 0 if m has no multiple-of-128 divisor <= max_lanes."""
    best_pref, smallest = 0, 0
    lane = 128
    while lane <= min(m, max_lanes):
        if m % lane == 0:
            if smallest == 0:
                smallest = lane
            if m // lane >= sub:
                best_pref = lane
        lane += 128
    return best_pref or smallest


def _largest_divisor(m: int, mult: int, cap: int) -> int:
    """Largest d <= cap with d % mult == 0 and m % d == 0; 0 if none."""
    best, d = 0, mult
    while d <= min(m, cap):
        if m % d == 0:
            best = d
        d += mult
    return best


def crelu(x: jax.Array, *, target_tile_bytes: int = 4 * 1024 * 1024) -> jax.Array:
    """CReLU forward. x: (N, C, H, W) -> relu(cat([x, -x], axis=1)): (N, 2C, H, W)."""
    n, c, h, w = x.shape
    m = c * h * w
    itemsize = jnp.dtype(x.dtype).itemsize
    sub = _sublane_multiple(x.dtype)

    # Keep the double-buffered pipeline peak (~6x input tile + margin) under
    # the 48 MiB VMEM limit we are willing to request (v7x physical is 64 MiB).
    target_tile_bytes = int(min(max(target_tile_bytes, 256 * 1024), 7 * 1024 * 1024))

    lane = _pick_lane_dim(m, sub)
    if lane:
        # ---------------- lane-dense 3-D path ----------------
        mr = m // lane
        x_view = x.reshape(n, mr, lane)
        out_shape = (n, 2, mr, lane)

        rows_budget = max(1, target_tile_bytes // (lane * itemsize))
        if mr <= rows_budget:
            tile_r = mr                                   # full dim -> legal
            slab = mr * lane * itemsize                   # one batch's bytes
            tile_b = int(min(n, max(1, target_tile_bytes // max(1, slab))))
            while tile_b > 1 and n % tile_b:              # prefer exact divisor
                tile_b -= 1
        else:
            tile_b = 1
            tile_r = _largest_divisor(mr, sub, rows_budget)   # exact divisor
            if tile_r == 0:
                tile_r = min(mr, max(sub, (rows_budget // sub) * sub))

        # v7x has 2 TensorCores: keep at least 2 parallel grid steps.
        if pl.cdiv(n, tile_b) * pl.cdiv(mr, tile_r) == 1:
            if n > 1:
                tile_b = max(1, tile_b // 2)
                while tile_b > 1 and n % tile_b:
                    tile_b -= 1
            elif mr >= 2 * sub:
                tile_r = (_largest_divisor(mr, sub, mr // 2)
                          or max(sub, ((mr // 2) // sub) * sub))

        grid = (pl.cdiv(n, tile_b), pl.cdiv(mr, tile_r))
        in_spec = pl.BlockSpec((tile_b, tile_r, lane), lambda b, i: (b, i, 0))
        out_spec = pl.BlockSpec((tile_b, 2, tile_r, lane), lambda b, i: (b, 0, i, 0))
        tile_in_bytes = tile_b * tile_r * lane * itemsize
    else:
        # -------- fallback: C*H*W not a multiple of 128 --------
        # Tile a (N, M) view with a multiple-of-128 lane block; the remainder
        # lane block (and any ragged batch block) is masked by the pipeline.
        x_view = x.reshape(n, m)
        out_shape = (n, 2, m)

        if m < 128:
            lane_blk = m                                  # full dim -> legal
        else:
            # Reserve room for at least `sub` rows inside the tile budget.
            lane_budget = max(128,
                              ((target_tile_bytes // (sub * itemsize)) // 128) * 128)
            lane_blk = min(lane_budget, (m // 128) * 128)

        rows_budget = max(1, target_tile_bytes // (lane_blk * itemsize))
        if n <= rows_budget:
            tile_b = n                                    # full dim -> legal
        else:
            tile_b = min(n, max(sub, (rows_budget // sub) * sub))

        # >= 2 grid steps for v7x, but only via a legal (multiple-of-sub) split.
        if pl.cdiv(n, tile_b) * pl.cdiv(m, lane_blk) == 1 and n >= 2 * sub:
            tile_b = max(sub, ((n // 2) // sub) * sub)

        grid = (pl.cdiv(n, tile_b), pl.cdiv(m, lane_blk))
        in_spec = pl.BlockSpec((tile_b, lane_blk), lambda b, l: (b, l))
        out_spec = pl.BlockSpec((tile_b, 2, lane_blk), lambda b, l: (b, 0, l))
        tile_in_bytes = tile_b * lane_blk * itemsize

    total = x.size
    cost = pl.CostEstimate(
        flops=3 * total,                        # negate + two maxes per element
        transcendentals=0,
        bytes_accessed=3 * total * itemsize,    # read x once, write 2x its bytes
    )
    # Double-buffered pipeline peak ~= 2 * (in + 2*in) = 6x the input tile.
    vmem_limit = int(min(48 * 1024 * 1024,
                         max(32 * 1024 * 1024, 6 * tile_in_bytes + (4 << 20))))

    out = pl.pallas_call(
        _crelu_kernel,
        out_shape=jax.ShapeDtypeStruct(out_shape, x.dtype),
        grid_spec=pltpu.PrefetchScalarGridSpec(
            num_scalar_prefetch=0,
            grid=grid,
            in_specs=[in_spec],
            out_specs=out_spec,
        ),
        compiler_params=pltpu.CompilerParams(
            # No reduction axis: both grid axes shard across TCs on v7x;
            # no-op (still correct) on single-TC v5e/v6e.
            dimension_semantics=("parallel", "parallel"),
            vmem_limit_bytes=vmem_limit,
        ),
        cost_estimate=cost,
    )(x_view)

    return out.reshape(n, 2 * c, h, w)


def crelu_ref(x: jax.Array) -> jax.Array:
    """Pure-JAX reference mirroring torch.relu(torch.cat((x, -x), 1))."""
    return jnp.maximum(jnp.concatenate([x, -x], axis=1), 0)


if __name__ == "__main__":
    key = jax.random.PRNGKey(0)
    shapes = [
        (2, 4, 16, 16),   # lane-dense path, one batch per step
        (8, 3, 8, 16),    # lane-dense path, several batches packed per step
        (2, 3, 5, 7),     # fallback (features % 128 != 0), full-dim blocks
        (2, 3, 5, 25),    # fallback with a masked remainder lane block
    ]
    for shape in shapes:
        key, sk = jax.random.split(key)
        x = jax.random.normal(sk, shape, dtype=jnp.float32)
        out = jax.block_until_ready(crelu(x))
        ref = crelu_ref(x)
        n, c, h, w = shape
        assert out.shape == (n, 2 * c, h, w), (out.shape, shape)
        assert out.dtype == x.dtype, out.dtype
        assert jnp.allclose(out, ref), f"mismatch vs reference for shape {shape}"

    print("KERNEL_OK")
</pallas_src>

<mosaic_0001>
module attributes {stable_mosaic.version = 11 : i64} {
  func.func @_crelu_kernel(%arg0: i32, %arg1: i32, %arg2: memref<1x8x128xf32, #tpu.memory_space<vmem>>, %arg3: memref<1x2x8x128xf32, #tpu.memory_space<vmem>>) attributes {dimension_semantics = [#tpu.dimension_semantics<parallel>, #tpu.dimension_semantics<parallel>], iteration_bounds = array<i64: 2, 1>, scalar_prefetch = 0 : i64, scratch_operands = 0 : i64, tpu.core_type = #tpu.core_type<tc>, window_params = [{transform_indices = @transform_0, window_bounds = array<i64: 1, 8, 128>}, {transform_indices = @transform_1, window_bounds = array<i64: 1, 2, 8, 128>}]} {
    %c0 = arith.constant 0 : index
    %c0_0 = arith.constant 0 : index
    %c0_1 = arith.constant 0 : index
    %0 = vector.load %arg2[%c0, %c0_0, %c0_1] : memref<1x8x128xf32, #tpu.memory_space<vmem>>, vector<1x8x128xf32>
    %cst = arith.constant 0.000000e+00 : f32
    %1 = vector.broadcast %cst : f32 to vector<1x8x128xf32>
    %2 = arith.maximumf %0, %1 : vector<1x8x128xf32>
    %c0_2 = arith.constant 0 : index
    %c0_3 = arith.constant 0 : index
    %c0_4 = arith.constant 0 : index
    %c0_5 = arith.constant 0 : index
    %3 = vector.load %arg3[%c0_2, %c0_3, %c0_4, %c0_5] : memref<1x2x8x128xf32, #tpu.memory_space<vmem>>, vector<1x1x8x128xf32>
    %4 = vector.shape_cast %3 : vector<1x1x8x128xf32> to vector<1x8x128xf32>
    %5 = vector.shape_cast %2 : vector<1x8x128xf32> to vector<1x1x8x128xf32>
    tpu.vector_store %arg3[%c0_2, %c0_3, %c0_4, %c0_5], %5 {strides = array<i32>} : memref<1x2x8x128xf32, #tpu.memory_space<vmem>>, vector<1x1x8x128xf32>,
    %cst_6 = arith.constant 0.000000e+00 : f32
    %6 = vector.broadcast %cst_6 : f32 to vector<1x8x128xf32>
    %7 = arith.subf %6, %0 : vector<1x8x128xf32>
    %cst_7 = arith.constant 0.000000e+00 : f32
    %8 = vector.broadcast %cst_7 : f32 to vector<1x8x128xf32>
    %9 = arith.maximumf %7, %8 : vector<1x8x128xf32>
    %c0_8 = arith.constant 0 : index
    %c1 = arith.constant 1 : index
    %c0_9 = arith.constant 0 : index
    %c0_10 = arith.constant 0 : index
    %10 = vector.load %arg3[%c0_8, %c1, %c0_9, %c0_10] : memref<1x2x8x128xf32, #tpu.memory_space<vmem>>, vector<1x1x8x128xf32>
    %11 = vector.shape_cast %10 : vector<1x1x8x128xf32> to vector<1x8x128xf32>
    %12 = vector.shape_cast %9 : vector<1x8x128xf32> to vector<1x1x8x128xf32>
    tpu.vector_store %arg3[%c0_8, %c1, %c0_9, %c0_10], %12 {strides = array<i32>} : memref<1x2x8x128xf32, #tpu.memory_space<vmem>>, vector<1x1x8x128xf32>,
    return
  }
  func.func @transform_0(%arg0: i32, %arg1: i32) -> (i32, i32, i32) {
    %c0_i32 = arith.constant 0 : i32
    %c0_i32_0 = arith.constant 0 : i32
    return %arg0, %arg1, %c0_i32 : i32, i32, i32
  }
  func.func @transform_1(%arg0: i32, %arg1: i32) -> (i32, i32, i32, i32) {
    %c0_i32 = arith.constant 0 : i32
    %c0_i32_0 = arith.constant 0 : i32
    %c0_i32_1 = arith.constant 0 : i32
    return %arg0, %c0_i32, %arg1, %c0_i32_0 : i32, i32, i32, i32
  }
}

</mosaic_0001>

<bundles_post_ra>
// kernel: tpu_custom_call.1
= control target key start
LH: loop header
LB: loop body
LE: loop exit
PB: predicated region body
PF: predicated region fallthrough
CT: control target
= control target key end

     0   :  { %6 = vsyncpa [#allocation3], 0  ;;  %s608_s0 = inlined_call_operand.hbm [shape: f32[2,8,128], index: 0, kind: input, shape index: {}]   ;;  %s609_s1 = inlined_call_operand.hbm [shape: f32[2,2,8,128], index: 1, kind: output, shape index: {}]  }
   0x1   :  { %8 = vsyncpa [#allocation3 + $0x1], 0 }
   0x2   :  { %9 = vsyncpa [#allocation4], 0 }
   0x3   :  { %11 = vsyncpa [#allocation4 + $0x1], 0  ;;  %s459_s6 = smov 0   ;;  %s461_s7 = smov 0  }
   0x4   :  { %s463_s8 = smov 0   ;;  %s465_s9 = smov 0  }
   0x5   :  { %s467_s10 = smov 0   ;;  %s469_s11 = smov 0  }
   0x6 LB: > { %s255_s12 = sadd.s32 4294967295, %s443_s11   ;;  %s256_s13 = sadd.s32 4294967294, %s443_s11   ;;  %s443_s11 = sphi %s469_s11, %s17_s11   ;;  %s439_s10 = sphi %s467_s10, %s621_s10   ;;  %s435_s9 = sphi %s465_s9, %s620_s9   ;;  %s431_s8 = sphi %s463_s8, %s619_s8   ;;  %s427_s7 = sphi %s461_s7, %s618_s7   ;;  %s423_s6 = sphi %s459_s6, %s617_s6  }
   0x7   : > { %s29_s14 = sadd.s32 1, %s439_s10  ;;  %s38_s15 = sadd.s32 1, %s431_s8 }
   0x8   : > { %p31_p0 = scmp.ge.s32.totalorder %s29_s14, 2  ;;  %p45_p1 = scmp.ne.s32.totalorder %s431_s8, %s427_s7 }
   0x9   : > { %p46_p2 = scmp.eq.s32.totalorder %s443_s11, 0  ;;  %p51_p3 = scmp.ne.s32.totalorder %s427_s7, %s423_s6 }
   0xa   : > { %s623_s14 = smov (%p31_p0, %s29_s14), 0  ;;  %p52_p5 = scmp.eq.s32.totalorder %s255_s12, 0 }
   0xb   : > { %p500_p4 = por %p46_p2, %p45_p1  ;;  %s33_s17 = ssub.s32 %s439_s10, %s623_s14 }
   0xc   : > { %p77_p6 = scmp.eq.s32.totalorder %s255_s12, 1  ;;  %p36_p7 = scmp.eq.s32.totalorder %s33_s17, 0 }
   0xd   : > { %p506_p8 = por %p52_p5, %p51_p3  ;;  %p83_p10 = scmp.eq.s32.totalorder %s256_s13, 1 }
   0xe   : > { %p510_p9 = por %p77_p6, %p45_p1  ;;  %p283_p13 = scmp.lt.s32.totalorder %s443_s11, 2 }
   0xf   : > { %s515_s20 = scalar_select %p36_p7, %s431_s8, %s38_s15  }
  0x10   : > { %p517_p11 = por %p83_p10, %p51_p3  ;;  %s103_s22 = sand.u32 1, %s431_s8  }
  0x11   : > { %s259_s23 = sshll.u32 %s103_s22, 3  ;;  %s260_s24 = sshll.u32 %s439_s10, 7 }
  0x12   : > { %s613_s21 = scalar_select %p517_p11, 1, 0 }
  0x13   : > { %s113_s27 = scalar_lea.hbm %s608_s0, %s260_s24  ;;  %s107_s28 = scalar_lea.vmem [#allocation2], %s259_s23 }
  0x14   : > { %s115_s29 = sshll.u32 %s107_s28, 4  ;;  %p530_p0 = pnand %p283_p13, %p500_p4  ;;  %s116_s29 = int_to_ptr.vmem [resolvable:$true] %s115_s29 }
  0x15   : > { %p261_p1 = scmp.ge.s32.totalorder %s443_s11, 1  ;;  %p120_p2 = scmp.lt.s32.totalorder %s443_s11, 3 }
  0x16   : > { %s104_s2 = scalar_lea.sflag [#allocation3], %s103_s22  ;;  %p337_p3 = pneg %p530_p0 }
  0x17   : > { %s348_s3 = scalar_lea.vmem %s116_s29, 128  ;;  %s445_s4 = smov [#allocation2]  }
  0x18   : > { %p349_p5 = scmp.ne.s32.totalorder %s116_s29, %s348_s3  ;;  %s353_s5 = sshll.u32 %s445_s4, 4  ;;  %s354_s5 = int_to_ptr.vmem [resolvable:$false] %s353_s5 }
  0x19   : > { %s355_s12 = scalar_lea.vmem %s354_s5, 256  ;;  %p356_p10 = scmp.lt.s32.totalorder %s116_s29, %s354_s5 }
  0x1a   : > { %p351_p6 = pnand %p349_p5, %p337_p3  ;;  %p357_p12 = scmp.lt.s32.totalorder %s355_s12, %s348_s3 }
  0x1c   : > { %p352_p7 = pneg %p351_p6  ;;  %p358_p4 = por %p357_p12, %p356_p10 }
  0x1e   : > { %p359_p13 = pnand %p358_p4, %p352_p7 }
  0x20   : > { %362 = shalt.err (!%p359_p13)
}
  0x21   : > { %278 = dma.hbm_to_vmem [thread:$0]  (!%p530_p0), %s113_s27, 128, %s116_s29, %s104_s2  }
  0x22   : > { %p121_p11 = pnand %p261_p1, %p120_p2 }
  0x23   : > { %s545_s13 = sand.u32 (!%p121_p11), 1, %s427_s7  }
  0x24   : > { %124 = sbr.rel (%p121_p11) target bundleno = 67 (0x43), region = 24  ;;  %s262_s15 = sshll.u32 (!%p121_p11), %s545_s13, 3 }
  0x25   : > { %s127_s16 = scalar_lea.sflag (!%p121_p11), [#allocation3], %s545_s13  ;;  %s130_s17 = scalar_lea.vmem (!%p121_p11), [#allocation2], %s262_s15 }
  0x29   : > { %414 = dma.done.wait (%p506_p8), %s127_s16, 128  }
  0x2a   : > { %416 = vsyncadd (%p506_p8), %s127_s16, 4294967168  ;;  %s263_s22 = sshll.u32 %s545_s13, 4  ;;  %s270_s25 = sshll.u32 %s435_s9, 8  ;;  %v149_v0 = vld [vmem:[%s130_s17] sm:$0xff] }
  0x2b   : > { %s148_s23 = scalar_lea.vmem [#allocation5], %s263_s22  ;;  %v150_v1 = vmax.f32 %v149_v0, 0.0  ;;  %v152_v2 = vsub.f32 0.0, %v149_v0  ;;  %s560_s18 = scalar_lea.hbm %s609_s1, %s270_s25 }
  0x2c   : > { %s171_s24 = sshll.u32 %s148_s23, 4  ;;  %s157_s28 = scalar_lea.sflag [#allocation4], %s545_s13  ;;  %s555_s24 = int_to_ptr.vmem [resolvable:$true] %s171_s24 }
  0x2d   : > { %151 = vst [vmem:[%s148_s23] sm:$0xff] %v150_v1  ;;  %v153_v3 = vmax.f32 %v152_v2, 0.0  ;;  %s363_s29 = scalar_lea.vmem %s555_s24, 256  ;;  %s446_s9 = smov [#allocation5]  }
  0x2e   : > { %p364_p8 = scmp.ne.s32.totalorder %s555_s24, %s363_s29  ;;  %s367_s30 = sshll.u32 %s446_s9, 4  ;;  %s368_s30 = int_to_ptr.vmem [resolvable:$false] %s367_s30 }
  0x2f   : > { %264 = vst [vmem:[%s148_s23 + $0x8] sm:$0xff] %v153_v3  ;;  %s369_s2 = scalar_lea.vmem %s368_s30, 512  ;;  %p370_p0 = scmp.lt.s32.totalorder %s555_s24, %s368_s30 }
  0x30   : > { %p365_p11 = pnand %p364_p8, %p510_p9  ;;  %p371_p1 = scmp.lt.s32.totalorder %s369_s2, %s363_s29 }
  0x32   : > { %p366_p12 = pneg %p365_p11  ;;  %p372_p2 = por %p371_p1, %p370_p0 }
  0x34   : > { %p373_p3 = pnand %p372_p2, %p366_p12 }
  0x36   : > { %376 = shalt.err (!%p373_p3)
}
  0x37   : > { %s377_s3 = scalar_lea.hbm %s560_s18, 256  ;;  %s381_s12 = scalar_lea.hbm %s609_s1, 512 }
  0x38   : > { %p378_p5 = scmp.ne.s32.totalorder %s560_s18, %s377_s3  ;;  %p382_p10 = scmp.lt.s32.totalorder %s560_s18, %s609_s1 }
  0x39   : > { %p383_p4 = scmp.lt.s32.totalorder %s381_s12, %s377_s3 }
  0x3a   : > { %p379_p6 = pnand %p378_p5, %p510_p9 }
  0x3b   : > { %p384_p13 = por %p383_p4, %p382_p10 }
  0x3c   : > { %p380_p7 = pneg %p379_p6 }
  0x3e   : > { %p385_p8 = pnand %p384_p13, %p380_p7 }
  0x40   : > { %388 = shalt.err (!%p385_p8)
}
  0x41   : > { %s447_s17 = smov 128   ;;  %s448_s22 = smov 8  }
  0x42   : > { %273 = dma.vmem_to_hbm [thread:$0]  (%p510_p9), %s555_s24, 256, %s560_s18, %s157_s28, %s447_s17, %s447_s17, %s448_s22  }
  0x43 PF: > { %s186_s23 = sand.u32 1, %s423_s6   ;;  %p615_p11 = scmp.ne.s32.totalorder %s613_s21, 0 }
  0x44   : > { %p616_p12 = scmp.ge.s32.totalorder %s443_s11, 2  ;;  %s187_s25 = scalar_lea.sflag [#allocation4], %s186_s23 }
  0x46   : > { %p280_p0 = pnand %p616_p12, %p615_p11 }
  0x48   : > { %p281_p1 = pneg %p280_p0 }
  0x4a   : > { %418 = dma.done.wait (%p281_p1), %s187_s25, 256  }
  0x4b   : > { %420 = vsyncadd (%p281_p1), %s187_s25, 4294967040  ;;  %s17_s11 = sadd.s32 1, %s443_s11   ;;  %s617_s6 = smov %s427_s7 }
  0x4c   : > { %p14_p2 = scmp.ge.s32.totalorder %s17_s11, 4   ;;  %s618_s7 = smov %s431_s8 }
  0x4d   : > { %s619_s8 = smov %s515_s20  ;;  %s620_s9 = smov %s439_s10 }
  0x4e   : > { %s621_s10 = smov %s623_s14  ;;  %16 = sbr.rel (!%p14_p2) target bundleno = 6 (0x6), region = 70 }
  0x53   :  { %192 = vsyncpa [#allocation3], 1 }
  0x54   :  { %194 = vsyncpa [#allocation3 + $0x1], 1 }
  0x55   :  { %195 = vsyncpa [#allocation4], 1 }
  0x56   :  { %197 = vsyncpa [#allocation4 + $0x1], 1 }

</bundles_post_ra>
